<compile_context>
chip_gen: v5e
topology: v5e:2x2
jax: 0.10.0
libtpu: 0.0.40
codegen_flags: <defaults>
</compile_context>

<pallas_src>
import jax
import jax.numpy as jnp
from jax.experimental import pallas as pl
from jax.experimental.pallas import tpu as pltpu


# ----------------------------------------------------------------------------
# Pallas kernel: whole GCN forward hot path fused in VMEM.
# All matmul operands arrive in bf16; accumulation is f32 on the MXU.
# ----------------------------------------------------------------------------
def gcn_fused_kernel(a_ref, x_ref, w1_ref, b1_ref, w2_ref, b2_ref,
                     pa_ref, wfc_ref, bfc_ref, out_ref):
    # ---- conv1 (reassociated): (A_hat @ X) @ W1 + b1, then ReLU ----
    ax = jnp.dot(a_ref[...], x_ref[...],
                 preferred_element_type=jnp.float32)            # [N, F] f32
    h1 = jnp.dot(ax.astype(jnp.bfloat16), w1_ref[...],
                 preferred_element_type=jnp.float32) + b1_ref[...]  # [N, H]
    h1 = jnp.maximum(h1, 0.0)

    # ---- conv2 + global_mean_pool, with pooling folded into PA = P @ A_hat:
    #      pooled = PA @ (h1 @ W2) + b2   (rows of P sum to 1 -> bias survives)
    hw2 = jnp.dot(h1.astype(jnp.bfloat16), w2_ref[...],
                  preferred_element_type=jnp.float32)           # [N, H]
    pooled = jnp.dot(pa_ref[...], hw2.astype(jnp.bfloat16),
                     preferred_element_type=jnp.float32) + b2_ref[...]  # [Gp, H]

    # ---- dropout (p=0.5) at inference == identity ----
    # TODO(synk): training-mode dropout (random mask via pltpu.prng_*) not
    # implemented in-kernel.

    # ---- fc: pooled @ Wfc_padded + bfc_padded  (lane-dense 128-wide store) ----
    out_ref[...] = (
        jnp.dot(pooled.astype(jnp.bfloat16), wfc_ref[...],
                preferred_element_type=jnp.float32)
        + bfc_ref[...]
    )


def _round_up(x, m):
    return ((x + m - 1) // m) * m


def gcn_forward_pallas(a_hat, x, w1, b1, w2, b2, pool, wfc, bfc):
    n, f = x.shape
    g = pool.shape[0]
    h = w1.shape[1]
    c = wfc.shape[1]

    g_pad = _round_up(max(g, 8), 8)      # sublane-aligned output rows
    c_pad = _round_up(max(c, 128), 128)  # lane-dense output columns

    # Fold mean pooling into the second propagation: PA = P @ A_hat  ([G, N]).
    pa = pool @ a_hat
    pa_pad = jnp.zeros((g_pad, n), jnp.float32).at[:g, :].set(pa)

    # Zero-pad fc weights/bias to a lane-dense 128-wide output slab.
    wfc_pad = jnp.zeros((h, c_pad), jnp.float32).at[:, :c].set(wfc)
    bfc_pad = jnp.zeros((1, c_pad), jnp.float32).at[:, :c].set(bfc)

    out_pad = pl.pallas_call(
        gcn_fused_kernel,
        out_shape=jax.ShapeDtypeStruct((g_pad, c_pad), jnp.float32),
        in_specs=[pl.BlockSpec(memory_space=pltpu.MemorySpace.VMEM)] * 9,
        out_specs=pl.BlockSpec(memory_space=pltpu.MemorySpace.VMEM),
    )(
        a_hat.astype(jnp.bfloat16),    # [N, N]   normalized adjacency
        x.astype(jnp.bfloat16),        # [N, F]   node features
        w1.astype(jnp.bfloat16),       # [F, H]
        b1.astype(jnp.float32),        # [1, H]
        w2.astype(jnp.bfloat16),       # [H, H]
        b2.astype(jnp.float32),        # [1, H]
        pa_pad.astype(jnp.bfloat16),   # [Gp, N]  pool @ A_hat (padded rows = 0)
        wfc_pad.astype(jnp.bfloat16),  # [H, Cp]
        bfc_pad,                       # [1, Cp]  f32
    )
    return out_pad[:g, :c]


# ----------------------------------------------------------------------------
# JAX glue: densify GCNConv normalization and global_mean_pool into matrices.
# ----------------------------------------------------------------------------
def build_normalized_adjacency(edge_index, num_nodes):
    """A_hat = D^-1/2 (A + I) D^-1/2, A[dst, src] = 1 for each edge src->dst."""
    src, dst = edge_index[0], edge_index[1]
    a = jnp.zeros((num_nodes, num_nodes), jnp.float32).at[dst, src].add(1.0)
    a = a + jnp.eye(num_nodes, dtype=jnp.float32)          # add self loops
    deg = a.sum(axis=1)
    dinv = jnp.where(deg > 0, 1.0 / jnp.sqrt(deg), 0.0)
    return dinv[:, None] * a * dinv[None, :]


def build_mean_pool_matrix(batch, num_graphs, num_nodes):
    """P[g, i] = 1/|nodes in graph g| if batch[i] == g else 0 (rows sum to 1)."""
    onehot = (batch[None, :] == jnp.arange(num_graphs)[:, None]).astype(jnp.float32)
    counts = jnp.maximum(onehot.sum(axis=1, keepdims=True), 1.0)
    return onehot / counts


def gcn_reference(a_hat, x, w1, b1, w2, b2, pool, wfc, bfc):
    """Pure f32 reference with the original (un-reassociated) math."""
    h1 = jnp.maximum(a_hat @ (x @ w1) + b1, 0.0)
    h2 = a_hat @ (h1 @ w2) + b2
    return (pool @ h2) @ wfc + bfc


# ----------------------------------------------------------------------------
if __name__ == "__main__":
    NUM_FEATURES = 16
    HIDDEN = 128
    NUM_CLASSES = 8
    N_NODES = 16       # two graphs of 8 nodes each
    N_GRAPHS = 2

    key = jax.random.PRNGKey(0)
    k_x, k_w1, k_w2, k_wfc, k_bfc = jax.random.split(key, 5)

    # Node features.
    x = jax.random.normal(k_x, (N_NODES, NUM_FEATURES), dtype=jnp.float32)

    # Two ring graphs of 8 nodes each, undirected (both edge directions).
    edges = []
    for g in range(N_GRAPHS):
        base = g * 8
        for i in range(8):
            a, b = base + i, base + (i + 1) % 8
            edges.append((a, b))
            edges.append((b, a))
    edge_index = jnp.array(edges, dtype=jnp.int32).T              # [2, E]
    batch = jnp.repeat(jnp.arange(N_GRAPHS, dtype=jnp.int32), 8)  # [N]

    # Deterministic parameter init (glorot-ish weights, zero GCN biases,
    # small random fc bias).
    def glorot(k, shape):
        fan_in, fan_out = shape
        scale = jnp.sqrt(6.0 / (fan_in + fan_out))
        return jax.random.uniform(k, shape, jnp.float32, -scale, scale)

    w1 = glorot(k_w1, (NUM_FEATURES, HIDDEN))
    b1 = jnp.zeros((1, HIDDEN), jnp.float32)
    w2 = glorot(k_w2, (HIDDEN, HIDDEN))
    b2 = jnp.zeros((1, HIDDEN), jnp.float32)
    wfc = glorot(k_wfc, (HIDDEN, NUM_CLASSES))
    bfc = 0.01 * jax.random.normal(k_bfc, (1, NUM_CLASSES), jnp.float32)
    # conv3 weights would be (HIDDEN, HIDDEN) but conv3 is unused in forward().

    a_hat = build_normalized_adjacency(edge_index, N_NODES)
    pool = build_mean_pool_matrix(batch, N_GRAPHS, N_NODES)

    out = gcn_forward_pallas(a_hat, x, w1, b1, w2, b2, pool, wfc, bfc)
    out = jax.block_until_ready(out)

    ref = gcn_reference(a_hat, x, w1, b1, w2, b2, pool, wfc, bfc)
    assert out.shape == (N_GRAPHS, NUM_CLASSES)
    # bf16 MXU operands vs f32 reference -> looser tolerance than the f32 kernel.
    assert jnp.allclose(out, ref, atol=5e-2, rtol=5e-2), (
        f"mismatch vs reference, max abs err = {jnp.max(jnp.abs(out - ref))}")

    print("KERNEL_OK")
</pallas_src>

<mosaic_0001>
module attributes {stable_mosaic.version = 11 : i64} {
  func.func @gcn_fused_kernel(%arg0: memref<16x16xbf16, #tpu.memory_space<vmem>>, %arg1: memref<16x16xbf16, #tpu.memory_space<vmem>>, %arg2: memref<16x128xbf16, #tpu.memory_space<vmem>>, %arg3: memref<1x128xf32, #tpu.memory_space<vmem>>, %arg4: memref<128x128xbf16, #tpu.memory_space<vmem>>, %arg5: memref<1x128xf32, #tpu.memory_space<vmem>>, %arg6: memref<8x16xbf16, #tpu.memory_space<vmem>>, %arg7: memref<128x128xbf16, #tpu.memory_space<vmem>>, %arg8: memref<1x128xf32, #tpu.memory_space<vmem>>, %arg9: memref<8x128xf32, #tpu.memory_space<vmem>>) attributes {dimension_semantics = [], scalar_prefetch = 0 : i64, scratch_operands = 0 : i64, tpu.core_type = #tpu.core_type<tc>} {
    %c0 = arith.constant 0 : index
    %c0_0 = arith.constant 0 : index
    %0 = vector.load %arg0[%c0, %c0_0] : memref<16x16xbf16, #tpu.memory_space<vmem>>, vector<16x16xbf16>
    %c0_1 = arith.constant 0 : index
    %c0_2 = arith.constant 0 : index
    %1 = vector.load %arg1[%c0_1, %c0_2] : memref<16x16xbf16, #tpu.memory_space<vmem>>, vector<16x16xbf16>
    %cst = arith.constant dense<0.000000e+00> : vector<16x16xf32>
    %2 = tpu.matmul %0, %1, %cst {dimension_numbers = #tpu.dot_dimension_numbers<[1], [0], [0], [1], [0, 0, 1, 1], [], []>} : vector<16x16xbf16>, vector<16x16xbf16>, vector<16x16xf32> -> vector<16x16xf32>
    %3 = arith.truncf %2 : vector<16x16xf32> to vector<16x16xbf16>
    %c0_3 = arith.constant 0 : index
    %c0_4 = arith.constant 0 : index
    %4 = vector.load %arg2[%c0_3, %c0_4] : memref<16x128xbf16, #tpu.memory_space<vmem>>, vector<16x128xbf16>
    %cst_5 = arith.constant dense<0.000000e+00> : vector<16x128xf32>
    %5 = tpu.matmul %3, %4, %cst_5 {dimension_numbers = #tpu.dot_dimension_numbers<[1], [0], [0], [1], [0, 0, 1, 1], [], []>} : vector<16x16xbf16>, vector<16x128xbf16>, vector<16x128xf32> -> vector<16x128xf32>
    %c0_6 = arith.constant 0 : index
    %c0_7 = arith.constant 0 : index
    %6 = vector.load %arg3[%c0_6, %c0_7] : memref<1x128xf32, #tpu.memory_space<vmem>>, vector<1x128xf32>
    %7 = vector.broadcast %6 : vector<1x128xf32> to vector<16x128xf32>
    %8 = arith.addf %5, %7 : vector<16x128xf32>
    %cst_8 = arith.constant 0.000000e+00 : f32
    %9 = vector.broadcast %cst_8 : f32 to vector<16x128xf32>
    %10 = arith.maximumf %8, %9 : vector<16x128xf32>
    %11 = arith.truncf %10 : vector<16x128xf32> to vector<16x128xbf16>
    %c0_9 = arith.constant 0 : index
    %c0_10 = arith.constant 0 : index
    %12 = vector.load %arg4[%c0_9, %c0_10] : memref<128x128xbf16, #tpu.memory_space<vmem>>, vector<128x128xbf16>
    %cst_11 = arith.constant dense<0.000000e+00> : vector<16x128xf32>
    %13 = tpu.matmul %11, %12, %cst_11 {dimension_numbers = #tpu.dot_dimension_numbers<[1], [0], [0], [1], [0, 0, 1, 1], [], []>} : vector<16x128xbf16>, vector<128x128xbf16>, vector<16x128xf32> -> vector<16x128xf32>
    %c0_12 = arith.constant 0 : index
    %c0_13 = arith.constant 0 : index
    %14 = vector.load %arg6[%c0_12, %c0_13] : memref<8x16xbf16, #tpu.memory_space<vmem>>, vector<8x16xbf16>
    %15 = arith.truncf %13 : vector<16x128xf32> to vector<16x128xbf16>
    %cst_14 = arith.constant dense<0.000000e+00> : vector<8x128xf32>
    %16 = tpu.matmul %14, %15, %cst_14 {dimension_numbers = #tpu.dot_dimension_numbers<[1], [0], [0], [1], [0, 0, 1, 1], [], []>} : vector<8x16xbf16>, vector<16x128xbf16>, vector<8x128xf32> -> vector<8x128xf32>
    %c0_15 = arith.constant 0 : index
    %c0_16 = arith.constant 0 : index
    %17 = vector.load %arg5[%c0_15, %c0_16] : memref<1x128xf32, #tpu.memory_space<vmem>>, vector<1x128xf32>
    %18 = vector.broadcast %17 : vector<1x128xf32> to vector<8x128xf32>
    %19 = arith.addf %16, %18 : vector<8x128xf32>
    %20 = arith.truncf %19 : vector<8x128xf32> to vector<8x128xbf16>
    %c0_17 = arith.constant 0 : index
    %c0_18 = arith.constant 0 : index
    %21 = vector.load %arg7[%c0_17, %c0_18] : memref<128x128xbf16, #tpu.memory_space<vmem>>, vector<128x128xbf16>
    %cst_19 = arith.constant dense<0.000000e+00> : vector<8x128xf32>
    %22 = tpu.matmul %20, %21, %cst_19 {dimension_numbers = #tpu.dot_dimension_numbers<[1], [0], [0], [1], [0, 0, 1, 1], [], []>} : vector<8x128xbf16>, vector<128x128xbf16>, vector<8x128xf32> -> vector<8x128xf32>
    %c0_20 = arith.constant 0 : index
    %c0_21 = arith.constant 0 : index
    %23 = vector.load %arg8[%c0_20, %c0_21] : memref<1x128xf32, #tpu.memory_space<vmem>>, vector<1x128xf32>
    %24 = vector.broadcast %23 : vector<1x128xf32> to vector<8x128xf32>
    %25 = arith.addf %22, %24 : vector<8x128xf32>
    %c0_22 = arith.constant 0 : index
    %c0_23 = arith.constant 0 : index
    %26 = vector.load %arg9[%c0_22, %c0_23] : memref<8x128xf32, #tpu.memory_space<vmem>>, vector<8x128xf32>
    tpu.vector_store %arg9[%c0_22, %c0_23], %25 {strides = array<i32>} : memref<8x128xf32, #tpu.memory_space<vmem>>, vector<8x128xf32>,
    return
  }
}

</mosaic_0001>

<bundles_post_ra>
// kernel: tpu_custom_call.1
= control target key start
LH: loop header
LB: loop body
LE: loop exit
PB: predicated region body
PF: predicated region fallthrough
CT: control target
= control target key end

     0   :  { %14 = vsyncpa [#allocation3], 0  ;;  %s790_s0 = inlined_call_operand.hbm [shape: bf16[16,16], index: 0, kind: input, shape index: {}]   ;;  %s791_s1 = inlined_call_operand.hbm [shape: bf16[16,16], index: 1, kind: input, shape index: {}]   ;;  %s792_s2 = inlined_call_operand.hbm [shape: bf16[16,128], index: 2, kind: input, shape index: {}]   ;;  %s793_s3 = inlined_call_operand.vmem [shape: f32[1,128], index: 3, kind: input, shape index: {}]   ;;  %s794_s4 = inlined_call_operand.hbm [shape: bf16[128,128], index: 4, kind: input, shape index: {}]   ;;  %s795_s5 = inlined_call_operand.hbm [shape: f32[1,128], index: 5, kind: input, shape index: {}]   ;;  %s796_s6 = inlined_call_operand.vmem [shape: bf16[8,16], index: 6, kind: input, shape index: {}]   ;;  %s797_s7 = inlined_call_operand.hbm [shape: bf16[128,128], index: 7, kind: input, shape index: {}]   ;;  %s798_s8 = inlined_call_operand.vmem [shape: f32[1,128], index: 8, kind: input, shape index: {}]   ;;  %s799_s9 = inlined_call_operand.hbm [shape: f32[8,128], index: 9, kind: output, shape index: {}]  }
   0x1   :  { %15 = vsyncpa [#allocation6], 0 }
   0x2   :  { %16 = vsyncpa [#allocation9], 0 }
   0x3   :  { %17 = vsyncpa [#allocation12], 0 }
   0x4   :  { %18 = vsyncpa [#allocation4], 0  ;;  %s36_s11 = sshll.u32 %s791_s1, 4  ;;  %s683_s12 = smov [#allocation5]   ;;  %s37_s11 = int_to_ptr.hbm [resolvable:$true] %s36_s11 }
   0x5   :  { %s38_s13 = sshll.u32 %s683_s12, 4  ;;  %s64_s16 = sshll.u32 %s794_s4, 4  ;;  %s39_s13 = int_to_ptr.vmem [resolvable:$true] %s38_s13  ;;  %s65_s16 = int_to_ptr.hbm [resolvable:$true] %s64_s16 }
   0x6   :  { %s684_s17 = smov 64   ;;  %s685_s18 = smov 4  }
   0x7   :  { %44 = dma.hbm_to_vmem [thread:$0]  %s37_s11, 128, %s39_s13, [#allocation6], %s684_s17, %s684_s17, %s685_s18  }
   0x8   :  { %s686_s19 = smov [#allocation8]   ;;  %s23_s1 = sshll.u32 %s790_s0, 4  ;;  %s24_s1 = int_to_ptr.hbm [resolvable:$true] %s23_s1 }
   0x9   :  { %s66_s20 = sshll.u32 %s686_s19, 4  ;;  %s49_s24 = sshll.u32 %s792_s2, 4  ;;  %s67_s20 = int_to_ptr.vmem [resolvable:$true] %s66_s20  ;;  %s50_s24 = int_to_ptr.hbm [resolvable:$true] %s49_s24 }
   0xa   :  { %72 = dma.hbm_to_vmem [thread:$0]  %s65_s16, 1024, %s67_s20, [#allocation9], %s684_s17, %s684_s17, %s685_s18  }
   0xb   :  { %s687_s25 = smov [#allocation2]   ;;  %s688_s27 = smov [#allocation7]  }
   0xc   :  { %s25_s26 = sshll.u32 %s687_s25, 4  ;;  %s51_s0 = sshll.u32 %s688_s27, 4  ;;  %s26_s26 = int_to_ptr.vmem [resolvable:$true] %s25_s26  ;;  %s52_s0 = int_to_ptr.vmem [resolvable:$true] %s51_s0 }
   0xd   :  { %31 = dma.hbm_to_vmem [thread:$0]  %s24_s1, 128, %s26_s26, [#allocation3], %s684_s17, %s684_s17, %s685_s18  }
   0xe   :  { %s78_s30 = sshll.u32 %s795_s5, 4  ;;  %s90_s11 = sshll.u32 %s797_s7, 4  ;;  %s79_s30 = int_to_ptr.hbm [resolvable:$true] %s78_s30  ;;  %s91_s11 = int_to_ptr.hbm [resolvable:$true] %s90_s11 }
   0xf   :  { %57 = dma.hbm_to_vmem [thread:$0]  %s50_s24, 128, %s52_s0, [#allocation6], %s684_s17, %s684_s17, %s685_s18  }
  0x10   :  { %s689_s12 = smov [#allocation10]   ;;  %s690_s14 = smov [#allocation11]  }
  0x11   :  { %s80_s13 = sshll.u32 %s689_s12, 4  ;;  %s92_s15 = sshll.u32 %s690_s14, 4  ;;  %s81_s13 = int_to_ptr.vmem [resolvable:$true] %s80_s13  ;;  %s93_s15 = int_to_ptr.vmem [resolvable:$true] %s92_s15 }
  0x12   :  { %83 = dma.hbm_to_vmem [thread:$0]  %s79_s30, 16, %s81_s13, [#allocation9]  }
  0x13   :  { %98 = dma.hbm_to_vmem [thread:$0]  %s91_s11, 1024, %s93_s15, [#allocation12], %s684_s17, %s684_s17, %s685_s18  }
  0x14   :  { %673 = dma.done.wait [#allocation3], 128  }
  0x15   :  { %674 = vsyncadd [#allocation3], 4294967168 }
  0x16   :  { %675 = dma.done.wait [#allocation6], 256  }
  0x17   :  { %676 = vsyncadd [#allocation6], 4294967040 }
  0x18   :  { %677 = dma.done.wait [#allocation9], 1040  }
  0x19   :  { %678 = vsyncadd [#allocation9], 4294966256 }
  0x1a   :  { %679 = dma.done.wait [#allocation12], 1024  }
  0x1b   :  { %680 = vsyncadd [#allocation12], 4294966272  ;;  %v475_v0 = vld [vmem:[#allocation5] sm:$0xff]  ;;  %v474_v1 = vld [vmem:[#allocation2] sm:$0xff]  ;;  %vm141_vm0 = vcmask 130048   ;;  %s691_s19 = smov [#allocation13]  }
  0x1c   :  { %v476_v2 = vld [vmem:[#allocation7] sm:$0xff]  ;;  %152 = vmatpush.bf16.msra.mxu1 %v475_v0  ;;  %v483_v4 = vld [vmem:[#allocation8 + $0x30] sm:$0xff]  ;;  %v482_v5 = vld [vmem:[#allocation8 + $0x28] sm:$0xff]  ;;  %s380_s20 = sshll.u32 %s691_s19, 4  ;;  %s381_s20 = int_to_ptr.vmem [resolvable:$true] %s380_s20 }
  0x1d   :  { %v484_v3 = vld [vmem:[#allocation8 + $0x38] sm:$0xff]  ;;  %v481_v6 = vld [vmem:[#allocation8 + $0x20] sm:$0xff]  ;;  %v479_v11 = vld [vmem:[#allocation8 + $0x10] sm:$0xff] }
  0x1e   :  { %256 = vmatpush.bf16.msra.mxu2 %v484_v3  ;;  %v480_v10 = vld [vmem:[#allocation8 + $0x18] sm:$0xff]  ;;  %v478_v12 = vld [vmem:[#allocation8 + $0x8] sm:$0xff]  ;;  %v477_v13 = vld [vmem:[#allocation8] sm:$0xff] }
  0x1f   :  { %403 = vmatmul.msk.bf16.vlgmr.msra.gmra.mxu1 %vm141_vm0, %v474_v1  ;;  %v502_v15 = vld [vmem:[%s793_s3] ss:$0 sm:$0xff]  ;;  %v492_v22 = vld [vmem:[#allocation11 + $0x38] sm:$0xff]  ;;  %v491_v23 = vld [vmem:[#allocation11 + $0x30] sm:$0xff] }
  0x20   :  { %182 = vmatpush.bf16.msrb.mxu1 %v476_v2  ;;  %361 = vmatpush.bf16.msra.mxu0 %v492_v22  ;;  %v490_v24 = vld [vmem:[#allocation11 + $0x28] sm:$0xff]  ;;  %v489_v25 = vld [vmem:[#allocation11 + $0x20] sm:$0xff]  ;;  %v488_v26 = vld [vmem:[#allocation11 + $0x18] sm:$0xff] }
  0x21   :  { %v487_v28 = vld [vmem:[#allocation11 + $0x10] sm:$0xff]  ;;  %v486_v29 = vld [vmem:[#allocation11 + $0x8] sm:$0xff]  ;;  %v485_v33 = vld [vmem:[#allocation11] sm:$0xff] }
  0x22   :  { %257 = vmatpush.bf16.msra.mxu2 %v483_v4  ;;  %v270_v32 = vld [vmem:[%s796_s6] sm:$0xf]  ;;  %v503_v34 = vld [vmem:[#allocation10] ss:$0 sm:$0xff]  ;;  %s382_s6 = sshll.u32 %s799_s9, 4  ;;  %s383_s6 = int_to_ptr.hbm [resolvable:$true] %s382_s6 }
  0x23   :  { %v504_v39 = vld [vmem:[%s798_s8] ss:$0 sm:$0xff] }
  0x24   :  { %362 = vmatpush.bf16.msra.mxu0 %v491_v23 }
  0x26   :  { %258 = vmatpush.bf16.msra.mxu2 %v482_v5 }
  0x28   :  { %363 = vmatpush.bf16.msra.mxu0 %v490_v24 }
  0x2a   :  { %259 = vmatpush.bf16.msra.mxu2 %v481_v6 }
  0x2c   :  { %364 = vmatpush.bf16.msra.mxu0 %v489_v25 }
  0x2e   :  { %260 = vmatpush.bf16.msra.mxu2 %v480_v10 }
  0x30   :  { %365 = vmatpush.bf16.msra.mxu0 %v488_v26 }
  0x32   :  { %261 = vmatpush.bf16.msra.mxu2 %v479_v11 }
  0x34   :  { %366 = vmatpush.bf16.msra.mxu0 %v487_v28 }
  0x36   :  { %262 = vmatpush.bf16.msra.mxu2 %v478_v12 }
  0x38   :  { %367 = vmatpush.bf16.msra.mxu0 %v486_v29 }
  0x3a   :  { %263 = vmatpush.bf16.msra.mxu2 %v477_v13 }
  0x3c   :  { %368 = vmatpush.bf16.msra.mxu0 %v485_v33 }
  0x9c   :  { %v154_v7 = vpop.f32.mrf.mxu1 }
  0xa4   :  { %v156_v8 = vpop.f32.mrf.mxu1 }
  0xa5   :  { %v159_v9 = vpack.c.bf16 %v156_v8, %v154_v7 }
  0xa7   :  { %408 = vmatmul.msk.bf16.vlgmr.msrb.gmra.mxu1 %vm141_vm0, %v159_v9 }
 0x124   :  { %v184_v14 = vpop.f32.mrf.mxu1 }
 0x125   :  { %v185_v16 = vadd.f32 %v502_v15, %v184_v14 }
 0x127   :  { %v189_v19 = vmax.f32 %v185_v16, 0.0 }
 0x12c   :  { %v186_v17 = vpop.f32.mrf.mxu1 }
 0x12d   :  { %v187_v18 = vadd.f32 %v502_v15, %v186_v17 }
 0x12f   :  { %v190_v20 = vmax.f32 %v187_v18, 0.0 }
 0x131   :  { %v191_v21 = vpack.c.bf16 %v190_v20, %v189_v19 }
 0x133   :  { %264 = vmatmul.bf16.vlgmr.msra.gmra.mxu2 %v191_v21 }
 0x1b6   :  { %v265_v27 = vpop.f32.mrf.mxu2 }
 0x1be   :  { %v267_v30 = vpop.f32.mrf.mxu2 }
 0x1bf   :  { %v271_v31 = vpack.c.bf16 %v267_v30, %v265_v27 }
 0x1c1   :  { %286 = vmatpush.bf16.msra.mxu3 %v271_v31 }
 0x1c4   :  { %441 = vmatmul.msk.bf16.vlgmr.msra.gmra.mxu3 %vm141_vm0, %v270_v32 }
 0x247   :  { %v288_v35 = vpop.f32.mrf.mxu3 }
 0x248   :  { %v289_v36 = vadd.f32 %v503_v34, %v288_v35 }
 0x24a   :  { %v292_v37 = vpack.c.bf16 %v289_v36, %v289_v36 }
 0x24c   :  { %369 = vmatmul.bf16.vlgmr.msra.gmra.mxu0 %v292_v37 }
 0x24f   :  { %v290_v38 = vpop.f32.mrf.mxu3 }
 0x2c9   :  { %v370_v40 = vpop.f32.mrf.mxu0 }
 0x2ca   :  { %v371_v41 = vadd.f32 %v504_v39, %v370_v40 }
 0x2cc   :  { %374 = vst [vmem:[#allocation13] sm:$0xff] %v371_v41 }
 0x2cd   :  { %385 = dma.vmem_to_hbm [thread:$0]  %s381_s20, 128, %s383_s6, [#allocation4]  }
 0x2d1   :  { %v372_v42 = vpop.f32.mrf.mxu0 }
 0x2d2   :  { %681 = dma.done.wait [#allocation4], 128  }
 0x2d3   :  { %682 = vsyncadd [#allocation4], 4294967168 }
 0x2d4   :  { %390 = vsyncpa [#allocation3], 1 }
 0x2d5   :  { %391 = vsyncpa [#allocation6], 1 }
 0x2d6   :  { %392 = vsyncpa [#allocation9], 1 }
 0x2d7   :  { %393 = vsyncpa [#allocation12], 1 }
 0x2d8   :  { %394 = vsyncpa [#allocation4], 1 }

</bundles_post_ra>
